<compile_context>
chip_gen: v7x
topology: tpu7x:2x2x1
jax: 0.10.0
libtpu: 0.0.40
codegen_flags: <defaults>
</compile_context>

<pallas_src>
import functools

import numpy as np
import jax
import jax.numpy as jnp
from jax import lax
from jax.experimental import pallas as pl
from jax.experimental.pallas import tpu as pltpu


LOGIT_FACTOR = 10.0


def _round_up(n, m):
    return ((n + m - 1) // m) * m


def _etf_kernel(x_ref, m_ref, o_ref, *, logit_factor):
    """Row sq-norm -> MXU matmul with resident ETF matrix -> one fused scale."""
    x = x_ref[...]                                                # (TB, D)
    xf = x if x.dtype == jnp.float32 else x.astype(jnp.float32)
    sq_sum = jnp.sum(xf * xf, axis=1, keepdims=True)              # (TB, 1) f32
    # clamp(sqrt(s), 1e-8) == sqrt(clamp(s, 1e-16)); rsqrt runs on the EUP.
    scale = logit_factor * lax.rsqrt(jnp.maximum(sq_sum, 1e-16))  # (TB, 1) f32
    out = jnp.dot(x, m_ref[...], preferred_element_type=jnp.float32)  # (TB, Cp)
    o_ref[...] = (out * scale).astype(o_ref.dtype)


def etf_classifier_forward(x, ori_m, *, logit_factor=LOGIT_FACTOR):
    """Pallas wrapper. x: (B, D), ori_m: (D, C) -> (B, C) float32 logits."""
    B, D = x.shape
    D2, C = ori_m.shape
    assert D == D2, f"feature dims disagree: {D} vs {D2}"

    # Lane-dense output: pad num_classes to a multiple of 128 with zero cols.
    C_pad = _round_up(C, 128)
    if C_pad != C:
        ori_m = jnp.pad(ori_m, ((0, 0), (0, C_pad - C)))

    # Batch tile: aim for 256 rows, shrink to fit a conservative VMEM budget
    # (double-buffered x + out tiles + resident M), staying sublane-aligned.
    itemsize = jnp.dtype(x.dtype).itemsize
    tb = min(256, _round_up(B, 8))
    budget = 24 << 20  # well under the 32 MiB default scoped VMEM limit
    while (tb > 8 and tb % 16 == 0 and
           (2 * tb * D * itemsize + 2 * tb * C_pad * 4 + D * C_pad * 4) > budget):
        tb //= 2

    # Pad batch to a multiple of the tile (zero rows -> zero logits, sliced off).
    B_pad = _round_up(B, tb)
    if B_pad != B:
        x = jnp.pad(x, ((0, B_pad - B), (0, 0)))

    grid = (B_pad // tb,)
    out = pl.pallas_call(
        functools.partial(_etf_kernel, logit_factor=logit_factor),
        out_shape=jax.ShapeDtypeStruct((B_pad, C_pad), jnp.float32),
        grid_spec=pl.GridSpec(
            grid=grid,
            in_specs=[
                pl.BlockSpec((tb, D), lambda i: (i, 0)),       # batch-tiled x
                pl.BlockSpec((D, C_pad), lambda i: (0, 0)),    # resident ETF M
            ],
            out_specs=pl.BlockSpec((tb, C_pad), lambda i: (i, 0)),
        ),
        compiler_params=pltpu.CompilerParams(
            dimension_semantics=("parallel",)),                # megacore on v7x
    )(x, ori_m)

    # TODO(synk): for very large D, add a K (feature) grid axis with a VMEM f32
    # accumulator + per-chunk sq_sum scratch; not required at these sizes.
    return out[:B, :C]


def make_etf_matrix(feat_in, num_classes, seed=0):
    """Deterministic ETF matrix: M = sqrt(C/(C-1)) * P @ (I - 1/C * ones)."""
    rng = np.random.RandomState(seed)
    a = rng.random_sample(size=(feat_in, num_classes))
    P, _ = np.linalg.qr(a)                                     # orthonormal cols
    assert np.allclose(P.T @ P, np.eye(num_classes), atol=1e-6)
    I = np.eye(num_classes)
    one = np.ones((num_classes, num_classes))
    M = np.sqrt(num_classes / (num_classes - 1)) * (P @ (I - one / num_classes))
    return jnp.asarray(M, dtype=jnp.float32)


if __name__ == "__main__":
    # Small shapes: batch=8, feat_in=32, num_classes=8 (feat_in >= num_classes,
    # so the `expand` branch of the reference module is not taken).
    # TODO(synk): the `expand` (feat_in < num_classes) nn.Linear path is not
    # exercised; it would just be an extra matmul+bias ahead of this kernel.
    B, D, C = 8, 32, 8

    key = jax.random.PRNGKey(0)
    x = jax.random.normal(key, (B, D), dtype=jnp.float32)
    ori_m = make_etf_matrix(D, C, seed=0)

    out = etf_classifier_forward(x, ori_m)
    out = jax.block_until_ready(out)

    # Pure-JAX reference (matches the torch formula exactly).
    norm = jnp.maximum(jnp.sqrt(jnp.sum(x * x, axis=1, keepdims=True)), 1e-8)
    ref = (x / norm) @ ori_m * LOGIT_FACTOR
    assert out.shape == (B, C)
    np.testing.assert_allclose(np.asarray(out), np.asarray(ref),
                               rtol=1e-5, atol=1e-5)

    print("KERNEL_OK")
</pallas_src>

<mosaic_0001>
module attributes {stable_mosaic.version = 11 : i64} {
  func.func @_etf_kernel(%arg0: i32, %arg1: memref<8x32xf32, #tpu.memory_space<vmem>>, %arg2: memref<32x128xf32, #tpu.memory_space<vmem>>, %arg3: memref<8x128xf32, #tpu.memory_space<vmem>>) attributes {dimension_semantics = [#tpu.dimension_semantics<parallel>], iteration_bounds = array<i64: 1>, scalar_prefetch = 0 : i64, scratch_operands = 0 : i64, tpu.core_type = #tpu.core_type<tc>, window_params = [{transform_indices = @transform_0, window_bounds = array<i64: 8, 32>}, {pipeline_mode = #tpu.pipeline_mode<synchronous>, transform_indices = @transform_1, window_bounds = array<i64: 32, 128>}, {transform_indices = @transform_2, window_bounds = array<i64: 8, 128>}]} {
    %c0 = arith.constant 0 : index
    %c0_0 = arith.constant 0 : index
    %0 = vector.load %arg1[%c0, %c0_0] : memref<8x32xf32, #tpu.memory_space<vmem>>, vector<8x32xf32>
    %1 = arith.mulf %0, %0 : vector<8x32xf32>
    %cst = arith.constant dense<0.000000e+00> : vector<8xf32>
    %2 = vector.multi_reduction <add>, %1, %cst [1] : vector<8x32xf32> to vector<8xf32>
    %3 = vector.shape_cast %2 : vector<8xf32> to vector<8x1xf32>
    %cst_1 = arith.constant 1.000000e-16 : f32
    %4 = vector.broadcast %cst_1 : f32 to vector<8x1xf32>
    %5 = arith.maximumf %3, %4 : vector<8x1xf32>
    %6 = math.rsqrt %5 : vector<8x1xf32>
    %cst_2 = arith.constant 1.000000e+01 : f32
    %7 = vector.broadcast %cst_2 : f32 to vector<8x1xf32>
    %8 = arith.mulf %7, %6 : vector<8x1xf32>
    %c0_3 = arith.constant 0 : index
    %c0_4 = arith.constant 0 : index
    %9 = vector.load %arg2[%c0_3, %c0_4] : memref<32x128xf32, #tpu.memory_space<vmem>>, vector<32x128xf32>
    %cst_5 = arith.constant dense<0.000000e+00> : vector<8x128xf32>
    %10 = tpu.matmul %0, %9, %cst_5 {dimension_numbers = #tpu.dot_dimension_numbers<[1], [0], [0], [1], [0, 0, 1, 1], [], []>} : vector<8x32xf32>, vector<32x128xf32>, vector<8x128xf32> -> vector<8x128xf32>
    %11 = vector.broadcast %8 : vector<8x1xf32> to vector<8x128xf32>
    %12 = arith.mulf %10, %11 : vector<8x128xf32>
    %c0_6 = arith.constant 0 : index
    %c0_7 = arith.constant 0 : index
    %13 = vector.load %arg3[%c0_6, %c0_7] : memref<8x128xf32, #tpu.memory_space<vmem>>, vector<8x128xf32>
    tpu.vector_store %arg3[%c0_6, %c0_7], %12 {strides = array<i32>} : memref<8x128xf32, #tpu.memory_space<vmem>>, vector<8x128xf32>,
    return
  }
  func.func @transform_0(%arg0: i32) -> (i32, i32) {
    %c0_i32 = arith.constant 0 : i32
    %c0_i32_0 = arith.constant 0 : i32
    return %arg0, %c0_i32 : i32, i32
  }
  func.func @transform_1(%arg0: i32) -> (i32, i32) {
    %c0_i32 = arith.constant 0 : i32
    %c0_i32_0 = arith.constant 0 : i32
    %c0_i32_1 = arith.constant 0 : i32
    return %c0_i32, %c0_i32_0 : i32, i32
  }
  func.func @transform_2(%arg0: i32) -> (i32, i32) {
    %c0_i32 = arith.constant 0 : i32
    %c0_i32_0 = arith.constant 0 : i32
    return %arg0, %c0_i32 : i32, i32
  }
}

</mosaic_0001>

<bundles_post_ra>
// kernel: tpu_custom_call.1
= control target key start
LH: loop header
LB: loop body
LE: loop exit
PB: predicated region body
PF: predicated region fallthrough
CT: control target
= control target key end

     0   :  { %7 = vsyncpa [#allocation3], 0  ;;  %s313_s0 = inlined_call_operand.hbm [shape: f32[8,32], index: 0, kind: input, shape index: {}]   ;;  %s314_s1 = inlined_call_operand.hbm [shape: f32[32,128], index: 1, kind: input, shape index: {}]   ;;  %s315_s2 = inlined_call_operand.hbm [shape: f32[8,128], index: 2, kind: output, shape index: {}]  }
   0x1   :  { %8 = vsyncpa [#allocation6], 0 }
   0x2   :  { %9 = vsyncpa [#allocation4], 0  ;;  %s247_s9 = smov [#allocation2]   ;;  %s248_s11 = smov [#allocation5]  }
   0x3   :  { %s16_s10 = sshll.u32 %s247_s9, 4  ;;  %s25_s12 = sshll.u32 %s248_s11, 4  ;;  %s17_s10 = int_to_ptr.vmem [resolvable:$true] %s16_s10  ;;  %s270_s12 = int_to_ptr.vmem [resolvable:$true] %s25_s12 }
   0x4   :  { %s175_s15 = scalar_lea.hbm %s313_s0, 128 }
   0x5   :  { %p176_p0 = scmp.ne.s32.totalorder %s313_s0, %s175_s15  ;;  %p179_p1 = scmp.lt.u32.totalorder %s175_s15, %s313_s0 }
   0x7   :  { %p181_p2 = pnand %p179_p1, %p176_p0 }
   0x9   :  { %184 = shalt.err (!%p181_p2)
}
   0xa   :  { %s185_s20 = scalar_lea.vmem %s17_s10, 128  ;;  %p190_p4 = scmp.lt.s32.totalorder %s17_s10, %s17_s10 }
   0xb   :  { %p186_p3 = scmp.ne.s32.totalorder %s17_s10, %s185_s20  ;;  %p191_p5 = scmp.lt.s32.totalorder %s185_s20, %s185_s20 }
   0xd   :  { %p192_p6 = por %p191_p5, %p190_p4 }
   0xf   :  { %p193_p7 = pnand %p192_p6, %p186_p3 }
  0x11   :  { %196 = shalt.err (!%p193_p7)
}
  0x12   :  { %19 = dma.hbm_to_vmem [thread:$0]  %s313_s0, 128, %s17_s10, [#allocation3]  }
  0x13   :  { %s197_s25 = scalar_lea.hbm %s314_s1, 512 }
  0x14   :  { %p198_p8 = scmp.ne.s32.totalorder %s314_s1, %s197_s25  ;;  %p201_p9 = scmp.lt.u32.totalorder %s197_s25, %s314_s1 }
  0x16   :  { %p203_p10 = pnand %p201_p9, %p198_p8 }
  0x18   :  { %206 = shalt.err (!%p203_p10)
}
  0x19   :  { %s207_s30 = scalar_lea.vmem %s270_s12, 512  ;;  %p212_p12 = scmp.lt.s32.totalorder %s270_s12, %s270_s12 }
  0x1a   :  { %p208_p11 = scmp.ne.s32.totalorder %s270_s12, %s207_s30  ;;  %p213_p13 = scmp.lt.s32.totalorder %s207_s30, %s207_s30 }
  0x1c   :  { %p214_p0 = por %p213_p13, %p212_p12 }
  0x1e   :  { %p215_p1 = pnand %p214_p0, %p208_p11 }
  0x20   :  { %218 = shalt.err (!%p215_p1)
}
  0x21   :  { %s249_s0 = smov 128   ;;  %s250_s3 = smov 8  }
  0x22   :  { %31 = dma.hbm_to_vmem [thread:$0]  %s314_s1, 512, %s270_s12, [#allocation6], %s249_s0, %s249_s0, %s250_s3  }
  0x23   :  { %241 = dma.done.wait [#allocation3], 128  }
  0x24   :  { %242 = vsyncadd [#allocation3], 4294967168 }
  0x25   :  { %243 = dma.done.wait [#allocation6], 512  }
  0x26   :  { %244 = vsyncadd [#allocation6], 4294966784  ;;  %v251_v0 = vmov 0.0|0.0   ;;  %vm252_vm0 = vmmov 0   ;;  %v253_v1 = vmov 0.0   ;;  %v47_v2 = vld [vmem:[#allocation5] sm:$0xff] }
  0x27   :  { %159 = vmatprep.subr.bf16.mxu0 %v251_v0  ;;  %156 = vmatprep.mubr.msk.f32.mxu0 %vm252_vm0, %v253_v1  ;;  %v48_v3 = vld [vmem:[#allocation5 + $0x8] sm:$0xff]  ;;  %v49_v4 = vld [vmem:[#allocation5 + $0x10] sm:$0xff]  ;;  %v50_v6 = vld [vmem:[#allocation5 + $0x18] sm:$0xff]  ;;  %vm40_vm1 = vcmask 261120   ;;  %s254_s1 = smov [#allocation7]  }
  0x28   :  { %v160_v5 = vpack.c.bf16 %v48_v3, %v47_v2  ;;  %v38_v7 = vld [vmem:[#allocation2] sm:$0xff]  ;;  %v163_v9 = vpack.c.bf16 %v50_v6, %v49_v4  ;;  %s132_s6 = sshll.u32 %s254_s1, 4  ;;  %s133_s6 = int_to_ptr.vmem [resolvable:$true] %s132_s6 }
  0x29   :  { %v39_v8 = vmul.f32 %v38_v7, %v38_v7  ;;  %s219_s7 = scalar_lea.vmem %s133_s6, 128  ;;  %p224_p3 = scmp.lt.s32.totalorder %s133_s6, %s133_s6 }
  0x2a   :  { %161 = vmatpush3.bf16.msra.mxu0 %v160_v5  ;;  %p220_p2 = scmp.ne.s32.totalorder %s133_s6, %s219_s7  ;;  %p225_p4 = scmp.lt.s32.totalorder %s219_s7, %s219_s7 }
  0x2b   :  { %162 = vmatprep.subr.bf16.mxu0 %v251_v0  ;;  %v41_v10 = vsel %vm40_vm1, %v39_v8, 0.0 }
  0x2c   :  { %42 = vadd.xlane.f32.xlu0 %v41_v10  ;;  %p226_p5 = por %p225_p4, %p224_p3 }
  0x2e   :  { %164 = vmatpush3.bf16.msra.mxu0 %v163_v9  ;;  %p227_p6 = pnand %p226_p5, %p220_p2 }
  0x31   :  { %157 = vmatmul.mubr.msk.f32.vlgmr.msra.gmra.mrb[0].mxu0 %vm40_vm1, %v38_v7 }
  0xb9   :  { %v43_v11 = vpop.xlane.xlu0 %42 }
  0xba   :  { %v44_v12 = vmax.f32 %v43_v11, 1e-16 }
  0xbc   :  { %173 = vrsqrt.f32 %v44_v12 }
  0xc6   :  { %v174_v13 = vpop.eup %173 }
  0xc7   :  { %v46_v14 = vmul.f32 10.0, %v174_v13 }
 0x104   :  { %v120_v15 = vpop.f32.mrb[0].mxu0 }
 0x105   :  { %v124_v16 = vmul.f32 %v120_v15, %v46_v14  ;;  %v158_v17 = vpop.f32.mrb[1].mxu0 }
 0x107   :  { %125 = vst [vmem:[#allocation7] sm:$0xff] %v124_v16 }
 0x108   :  { %230 = shalt.err (!%p227_p6)
}
 0x109   :  { %s231_s10 = scalar_lea.hbm %s315_s2, 128 }
 0x10a   :  { %p232_p7 = scmp.ne.s32.totalorder %s315_s2, %s231_s10  ;;  %p235_p8 = scmp.lt.u32.totalorder %s231_s10, %s315_s2 }
 0x10c   :  { %p237_p9 = pnand %p235_p8, %p232_p7 }
 0x10e   :  { %240 = shalt.err (!%p237_p9)
}
 0x10f   :  { %135 = dma.vmem_to_hbm [thread:$0]  %s133_s6, 128, %s315_s2, [#allocation4]  }
 0x110   :  { %245 = dma.done.wait [#allocation4], 128  }
 0x111   :  { %246 = vsyncadd [#allocation4], 4294967168 }
 0x112   :  { %139 = vsyncpa [#allocation3], 1 }
 0x113   :  { %140 = vsyncpa [#allocation6], 1 }
 0x114   :  { %141 = vsyncpa [#allocation4], 1 }

</bundles_post_ra>
